<compile_context>
chip_gen: v7x
topology: tpu7x:2x2x1
jax: 0.10.0
libtpu: 0.0.40
codegen_flags: <defaults>
</compile_context>

<pallas_src>
import jax
import jax.numpy as jnp
from jax import lax
from jax.experimental import pallas as pl
from jax.experimental.pallas import tpu as pltpu

NEG_SLOPE = 0.01  # PyTorch nn.LeakyReLU default


def _leaky_relu(v):
    return jnp.where(v >= 0, v, NEG_SLOPE * v)


def clip_adapter_kernel(x_ref, w1_ref, w2_ref, inter_ref, resid_ref):
    # x_ref:     (tm, c_in)          tile of tokens
    # w1_ref:    (bottleneck, c_in)  full weight (PyTorch layout)
    # w2_ref:    (c_in, bottleneck)  full weight (PyTorch layout)
    # inter_ref: (tm, bottleneck)
    # resid_ref: (tm, c_in)
    x = x_ref[...]

    # fc1: x @ W1^T  (contract last dims of both operands — no transpose).
    h = lax.dot_general(
        x, w1_ref[...],
        dimension_numbers=(((1,), (1,)), ((), ())),
        preferred_element_type=jnp.float32)
    h = _leaky_relu(h)                       # f32 epilogue
    inter_ref[...] = h.astype(inter_ref.dtype)

    # fc2: h @ W2^T  (again contracting last dims; h cast to the MXU operand
    # dtype — for f32 inputs this is a no-op, for bf16 it matches a bf16
    # PyTorch module).
    y = lax.dot_general(
        h.astype(w2_ref.dtype), w2_ref[...],
        dimension_numbers=(((1,), (1,)), ((), ())),
        preferred_element_type=jnp.float32)
    y = _leaky_relu(y)                       # f32 epilogue
    resid_ref[...] = y.astype(resid_ref.dtype)


def _round_up(a, b):
    return ((a + b - 1) // b) * b


def clip_adapter(x, w1, w2, *, tm=256):
    """x: (..., c_in); w1: (bottleneck, c_in); w2: (c_in, bottleneck).

    Returns (x_intermediate, y_residual) with shapes (..., bottleneck) and
    (..., c_in), matching the PyTorch module.
    """
    c_in = x.shape[-1]
    bottleneck = w1.shape[0]
    assert w1.shape == (bottleneck, c_in)
    assert w2.shape == (c_in, bottleneck)
    lead_shape = x.shape[:-1]

    x2d = x.reshape(-1, c_in)
    n = x2d.shape[0]

    # Sublane alignment: 8 rows for 4-byte dtypes, 16 for 2-byte (bf16).
    row_align = 8 if x.dtype.itemsize >= 4 else 16

    # Effective row tile: as large as requested, but never (much) bigger than
    # the token count, and always sublane-aligned.
    tm_eff = min(_round_up(tm, row_align), _round_up(n, row_align))

    # Pad the token axis up to a multiple of the tile (ragged N support).
    n_pad = _round_up(n, tm_eff)
    if n_pad != n:
        x2d = jnp.pad(x2d, ((0, n_pad - n), (0, 0)))

    grid = (n_pad // tm_eff,)
    inter2d, resid2d = pl.pallas_call(
        clip_adapter_kernel,
        out_shape=(
            jax.ShapeDtypeStruct((n_pad, bottleneck), x.dtype),
            jax.ShapeDtypeStruct((n_pad, c_in), x.dtype),
        ),
        grid_spec=pltpu.PrefetchScalarGridSpec(
            num_scalar_prefetch=0,
            grid=grid,
            in_specs=[
                pl.BlockSpec((tm_eff, c_in), lambda i: (i, 0)),       # x tile
                pl.BlockSpec((bottleneck, c_in), lambda i: (0, 0)),   # W1 (full, constant)
                pl.BlockSpec((c_in, bottleneck), lambda i: (0, 0)),   # W2 (full, constant)
            ],
            out_specs=[
                pl.BlockSpec((tm_eff, bottleneck), lambda i: (i, 0)),
                pl.BlockSpec((tm_eff, c_in), lambda i: (i, 0)),
            ],
        ),
        compiler_params=pltpu.CompilerParams(
            dimension_semantics=("parallel",),
        ),
    )(x2d, w1, w2)

    inter2d = inter2d[:n]
    resid2d = resid2d[:n]
    return (inter2d.reshape(*lead_shape, bottleneck),
            resid2d.reshape(*lead_shape, c_in))


if __name__ == "__main__":
    # Small, deterministic example with lane-dense (multiple-of-128) feature
    # dims: batch=2, seq=8, c_in=256, bottleneck=128.
    key = jax.random.PRNGKey(0)
    k_x, k_w1, k_w2 = jax.random.split(key, 3)

    B, S, C_IN, BOTTLENECK = 2, 8, 256, 128

    x = jax.random.normal(k_x, (B, S, C_IN), dtype=jnp.float32)
    # nn.Linear default init ~ U(-1/sqrt(fan_in), 1/sqrt(fan_in)).
    w1 = jax.random.uniform(k_w1, (BOTTLENECK, C_IN), dtype=jnp.float32,
                            minval=-1.0, maxval=1.0) / jnp.sqrt(C_IN)
    w2 = jax.random.uniform(k_w2, (C_IN, BOTTLENECK), dtype=jnp.float32,
                            minval=-1.0, maxval=1.0) / jnp.sqrt(BOTTLENECK)

    x_intermediate, y_residual = clip_adapter(x, w1, w2)
    jax.block_until_ready((x_intermediate, y_residual))

    # Pure-JAX reference check (same semantics as the PyTorch forward).
    def leaky(v):
        return jnp.where(v >= 0, v, NEG_SLOPE * v)

    ref_h = leaky(jnp.einsum("...c,oc->...o", x, w1))
    ref_y = leaky(jnp.einsum("...o,co->...c", ref_h, w2))

    assert x_intermediate.shape == (B, S, BOTTLENECK)
    assert y_residual.shape == (B, S, C_IN)
    # Tolerance covers MXU default-precision f32 matmuls vs. the XLA reference.
    assert jnp.allclose(x_intermediate, ref_h, atol=2e-2, rtol=2e-2)
    assert jnp.allclose(y_residual, ref_y, atol=2e-2, rtol=2e-2)

    print("KERNEL_OK")
</pallas_src>

<mosaic_0001>
module attributes {stable_mosaic.version = 11 : i64} {
  func.func @clip_adapter_kernel(%arg0: i32, %arg1: memref<16x256xf32, #tpu.memory_space<vmem>>, %arg2: memref<128x256xf32, #tpu.memory_space<vmem>>, %arg3: memref<256x128xf32, #tpu.memory_space<vmem>>, %arg4: memref<16x128xf32, #tpu.memory_space<vmem>>, %arg5: memref<16x256xf32, #tpu.memory_space<vmem>>) attributes {dimension_semantics = [#tpu.dimension_semantics<parallel>], iteration_bounds = array<i64: 1>, scalar_prefetch = 0 : i64, scratch_operands = 0 : i64, tpu.core_type = #tpu.core_type<tc>, window_params = [{transform_indices = @transform_0, window_bounds = array<i64: 16, 256>}, {pipeline_mode = #tpu.pipeline_mode<synchronous>, transform_indices = @transform_1, window_bounds = array<i64: 128, 256>}, {pipeline_mode = #tpu.pipeline_mode<synchronous>, transform_indices = @transform_2, window_bounds = array<i64: 256, 128>}, {transform_indices = @transform_3, window_bounds = array<i64: 16, 128>}, {transform_indices = @transform_4, window_bounds = array<i64: 16, 256>}]} {
    %c0 = arith.constant 0 : index
    %c0_0 = arith.constant 0 : index
    %0 = vector.load %arg1[%c0, %c0_0] : memref<16x256xf32, #tpu.memory_space<vmem>>, vector<16x256xf32>
    %c0_1 = arith.constant 0 : index
    %c0_2 = arith.constant 0 : index
    %1 = vector.load %arg2[%c0_1, %c0_2] : memref<128x256xf32, #tpu.memory_space<vmem>>, vector<128x256xf32>
    %cst = arith.constant dense<0.000000e+00> : vector<16x128xf32>
    %2 = tpu.matmul %0, %1, %cst {dimension_numbers = #tpu.dot_dimension_numbers<[1], [1], [0], [0], [0, 0, 1, 0], [], []>} : vector<16x256xf32>, vector<128x256xf32>, vector<16x128xf32> -> vector<16x128xf32>
    %cst_3 = arith.constant 0.000000e+00 : f32
    %3 = vector.broadcast %cst_3 : f32 to vector<16x128xf32>
    %4 = arith.cmpf oge, %2, %3 : vector<16x128xf32>
    %cst_4 = arith.constant 0.00999999977 : f32
    %5 = vector.broadcast %cst_4 : f32 to vector<16x128xf32>
    %6 = arith.mulf %5, %2 : vector<16x128xf32>
    %7 = arith.select %4, %2, %6 : vector<16x128xi1>, vector<16x128xf32>
    %c0_5 = arith.constant 0 : index
    %c0_6 = arith.constant 0 : index
    %8 = vector.load %arg4[%c0_5, %c0_6] : memref<16x128xf32, #tpu.memory_space<vmem>>, vector<16x128xf32>
    tpu.vector_store %arg4[%c0_5, %c0_6], %7 {strides = array<i32>} : memref<16x128xf32, #tpu.memory_space<vmem>>, vector<16x128xf32>,
    %c0_7 = arith.constant 0 : index
    %c0_8 = arith.constant 0 : index
    %9 = vector.load %arg3[%c0_7, %c0_8] : memref<256x128xf32, #tpu.memory_space<vmem>>, vector<256x128xf32>
    %cst_9 = arith.constant dense<0.000000e+00> : vector<16x256xf32>
    %10 = tpu.matmul %7, %9, %cst_9 {dimension_numbers = #tpu.dot_dimension_numbers<[1], [1], [0], [0], [0, 0, 1, 0], [], []>} : vector<16x128xf32>, vector<256x128xf32>, vector<16x256xf32> -> vector<16x256xf32>
    %cst_10 = arith.constant 0.000000e+00 : f32
    %11 = vector.broadcast %cst_10 : f32 to vector<16x256xf32>
    %12 = arith.cmpf oge, %10, %11 : vector<16x256xf32>
    %cst_11 = arith.constant 0.00999999977 : f32
    %13 = vector.broadcast %cst_11 : f32 to vector<16x256xf32>
    %14 = arith.mulf %13, %10 : vector<16x256xf32>
    %15 = arith.select %12, %10, %14 : vector<16x256xi1>, vector<16x256xf32>
    %c0_12 = arith.constant 0 : index
    %c0_13 = arith.constant 0 : index
    %16 = vector.load %arg5[%c0_12, %c0_13] : memref<16x256xf32, #tpu.memory_space<vmem>>, vector<16x256xf32>
    tpu.vector_store %arg5[%c0_12, %c0_13], %15 {strides = array<i32>} : memref<16x256xf32, #tpu.memory_space<vmem>>, vector<16x256xf32>,
    return
  }
  func.func @transform_0(%arg0: i32) -> (i32, i32) {
    %c0_i32 = arith.constant 0 : i32
    %c0_i32_0 = arith.constant 0 : i32
    return %arg0, %c0_i32 : i32, i32
  }
  func.func @transform_1(%arg0: i32) -> (i32, i32) {
    %c0_i32 = arith.constant 0 : i32
    %c0_i32_0 = arith.constant 0 : i32
    %c0_i32_1 = arith.constant 0 : i32
    return %c0_i32, %c0_i32_0 : i32, i32
  }
  func.func @transform_2(%arg0: i32) -> (i32, i32) {
    %c0_i32 = arith.constant 0 : i32
    %c0_i32_0 = arith.constant 0 : i32
    %c0_i32_1 = arith.constant 0 : i32
    return %c0_i32, %c0_i32_0 : i32, i32
  }
  func.func @transform_3(%arg0: i32) -> (i32, i32) {
    %c0_i32 = arith.constant 0 : i32
    %c0_i32_0 = arith.constant 0 : i32
    return %arg0, %c0_i32 : i32, i32
  }
  func.func @transform_4(%arg0: i32) -> (i32, i32) {
    %c0_i32 = arith.constant 0 : i32
    %c0_i32_0 = arith.constant 0 : i32
    return %arg0, %c0_i32 : i32, i32
  }
}

</mosaic_0001>

<bundles_post_ra>
// kernel: tpu_custom_call.1
= control target key start
LH: loop header
LB: loop body
LE: loop exit
PB: predicated region body
PF: predicated region fallthrough
CT: control target
= control target key end

     0   :  { %10 = vsyncpa [#allocation3], 0  ;;  %s680_s0 = inlined_call_operand.hbm [shape: f32[16,256], index: 0, kind: input, shape index: {}]   ;;  %s681_s1 = inlined_call_operand.hbm [shape: f32[128,256], index: 1, kind: input, shape index: {}]   ;;  %s682_s2 = inlined_call_operand.hbm [shape: f32[256,128], index: 2, kind: input, shape index: {}]   ;;  %s683_s3 = inlined_call_operand.hbm [shape: f32[16,128], index: 3, kind: output, shape index: {0}]   ;;  %s684_s4 = inlined_call_operand.hbm [shape: f32[16,256], index: 4, kind: output, shape index: {1}]  }
   0x1   :  { %11 = vsyncpa [#allocation6], 0 }
   0x2   :  { %12 = vsyncpa [#allocation4], 0 }
   0x3   :  { %13 = vsyncpa [#allocation10], 0  ;;  %s564_s15 = smov [#allocation5]   ;;  %s565_s17 = smov [#allocation2]  }
   0x4   :  { %s31_s16 = sshll.u32 %s564_s15, 4  ;;  %s19_s18 = sshll.u32 %s565_s17, 4  ;;  %s32_s16 = int_to_ptr.vmem [resolvable:$true] %s31_s16  ;;  %s598_s18 = int_to_ptr.vmem [resolvable:$true] %s19_s18 }
   0x5   :  { %s446_s21 = scalar_lea.hbm %s681_s1, 4096 }
   0x6   :  { %p447_p0 = scmp.ne.s32.totalorder %s681_s1, %s446_s21  ;;  %p450_p1 = scmp.lt.u32.totalorder %s446_s21, %s681_s1 }
   0x8   :  { %p452_p2 = pnand %p450_p1, %p447_p0 }
   0xa   :  { %455 = shalt.err (!%p452_p2)
}
   0xb   :  { %s456_s26 = scalar_lea.vmem %s32_s16, 4096  ;;  %p461_p4 = scmp.lt.s32.totalorder %s32_s16, %s32_s16 }
   0xc   :  { %p457_p3 = scmp.ne.s32.totalorder %s32_s16, %s456_s26  ;;  %p462_p5 = scmp.lt.s32.totalorder %s456_s26, %s456_s26 }
   0xe   :  { %p463_p6 = por %p462_p5, %p461_p4 }
  0x10   :  { %p464_p7 = pnand %p463_p6, %p457_p3 }
  0x12   :  { %467 = shalt.err (!%p464_p7)
}
  0x13   :  { %s566_s27 = smov 256   ;;  %s567_s28 = smov 16  }
  0x14   :  { %37 = dma.hbm_to_vmem [thread:$0]  %s681_s1, 4096, %s32_s16, [#allocation6], %s566_s27, %s566_s27, %s567_s28  }
  0x15   :  { %s468_s7 = scalar_lea.hbm %s680_s0, 512 }
  0x16   :  { %p469_p8 = scmp.ne.s32.totalorder %s680_s0, %s468_s7  ;;  %p472_p9 = scmp.lt.u32.totalorder %s468_s7, %s680_s0 }
  0x18   :  { %p474_p10 = pnand %p472_p9, %p469_p8 }
  0x1a   :  { %477 = shalt.err (!%p474_p10)
}
  0x1b   :  { %s478_s12 = scalar_lea.vmem %s598_s18, 512  ;;  %p483_p12 = scmp.lt.s32.totalorder %s598_s18, %s598_s18 }
  0x1c   :  { %p479_p11 = scmp.ne.s32.totalorder %s598_s18, %s478_s12  ;;  %p484_p13 = scmp.lt.s32.totalorder %s478_s12, %s478_s12 }
  0x1e   :  { %p485_p0 = por %p484_p13, %p483_p12 }
  0x20   :  { %p486_p1 = pnand %p485_p0, %p479_p11 }
  0x22   :  { %489 = shalt.err (!%p486_p1)
}
  0x23   :  { %25 = dma.hbm_to_vmem [thread:$0]  %s680_s0, 512, %s598_s18, [#allocation3], %s566_s27, %s566_s27, %s567_s28  }
  0x24   :  { %s568_s14 = smov [#allocation7]   ;;  %s490_s19 = scalar_lea.hbm %s682_s2, 4096 }
  0x25   :  { %s43_s15 = sshll.u32 %s568_s14, 4  ;;  %p491_p2 = scmp.ne.s32.totalorder %s682_s2, %s490_s19  ;;  %s44_s15 = int_to_ptr.vmem [resolvable:$true] %s43_s15 }
  0x26   :  { %p494_p3 = scmp.lt.u32.totalorder %s490_s19, %s682_s2 }
  0x28   :  { %p496_p4 = pnand %p494_p3, %p491_p2 }
  0x2a   :  { %499 = shalt.err (!%p496_p4)
}
  0x2b   :  { %s500_s24 = scalar_lea.vmem %s44_s15, 4096  ;;  %p505_p6 = scmp.lt.s32.totalorder %s44_s15, %s44_s15 }
  0x2c   :  { %p501_p5 = scmp.ne.s32.totalorder %s44_s15, %s500_s24  ;;  %p506_p7 = scmp.lt.s32.totalorder %s500_s24, %s500_s24 }
  0x2e   :  { %p507_p8 = por %p506_p7, %p505_p6 }
  0x30   :  { %p508_p9 = pnand %p507_p8, %p501_p5 }
  0x32   :  { %511 = shalt.err (!%p508_p9)
}
  0x33   :  { %s569_s0 = smov 128   ;;  %s570_s18 = smov 8  }
  0x34   :  { %49 = dma.hbm_to_vmem [thread:$0]  %s682_s2, 4096, %s44_s15, [#allocation6], %s569_s0, %s569_s0, %s570_s18  }
  0x35   :  { %556 = dma.done.wait [#allocation3], 512  }
  0x36   :  { %557 = vsyncadd [#allocation3], 4294966784 }
  0x37   :  { %558 = dma.done.wait [#allocation6], 8192  }
  0x38   :  { %559 = vsyncadd [#allocation6], 4294959104  ;;  %v64_v0 = vld [vmem:[#allocation5 + $0x8] sm:$0xff]  ;;  %v66_v1 = vld [vmem:[#allocation5 + $0x18] sm:$0xff]  ;;  %s571_s2 = smov [#allocation8]  }
  0x39   :  { %v63_v2 = vld [vmem:[#allocation5] sm:$0xff]  ;;  %v373_v3 = vpack.c.bf16 %v66_v1, %v64_v0  ;;  %v65_v4 = vld [vmem:[#allocation5 + $0x10] sm:$0xff]  ;;  %v68_v5 = vld [vmem:[#allocation5 + $0x28] sm:$0xff]  ;;  %s308_s29 = sshll.u32 %s571_s2, 4  ;;  %s309_s29 = int_to_ptr.vmem [resolvable:$true] %s308_s29 }
  0x3a   :  { %v70_v6 = vld [vmem:[#allocation5 + $0x38] sm:$0xff]  ;;  %v375_v7 = vpack.c.bf16 %v65_v4, %v63_v2  ;;  %v67_v9 = vld [vmem:[#allocation5 + $0x20] sm:$0xff]  ;;  %v69_v10 = vld [vmem:[#allocation5 + $0x30] sm:$0xff]  ;;  %s512_s30 = scalar_lea.vmem %s309_s29, 256  ;;  %p517_p11 = scmp.lt.s32.totalorder %s309_s29, %s309_s29 }
  0x3b   :  { %v377_v8 = vpack.c.bf16 %v70_v6, %v68_v5  ;;  %374 = vmatprep.subr.bf16.mxu0 %v373_v3  ;;  %v72_v11 = vld [vmem:[#allocation5 + $0x48] sm:$0xff]  ;;  %v74_v12 = vld [vmem:[#allocation5 + $0x58] sm:$0xff]  ;;  %v379_v13 = vpack.c.bf16 %v69_v10, %v67_v9  ;;  %v71_v16 = vld [vmem:[#allocation5 + $0x40] sm:$0xff]  ;;  %p513_p10 = scmp.ne.s32.totalorder %s309_s29, %s512_s30  ;;  %p518_p12 = scmp.lt.s32.totalorder %s512_s30, %s512_s30 }
  0x3c   :  { %376 = vmatpush1.bf16.xpose.msra.mxu0 %v375_v7  ;;  %v381_v14 = vpack.c.bf16 %v74_v12, %v72_v11  ;;  %v60_v15 = vld [vmem:[#allocation2 + $0x8] sm:$0xff]  ;;  %v73_v17 = vld [vmem:[#allocation5 + $0x50] sm:$0xff]  ;;  %v194_v18 = vld [vmem:[#allocation7 + $0x80] sm:$0xff] }
  0x3d   :  { %378 = vmatprep.subr.bf16.mxu0 %v377_v8  ;;  %159 = vmatprep.mubr.f32.mxu0 %v60_v15  ;;  %v195_v19 = vld [vmem:[#allocation7 + $0x88] sm:$0xff]  ;;  %v178_v20 = vld [vmem:[#allocation7] sm:$0xff]  ;;  %v196_v23 = vld [vmem:[#allocation7 + $0x90] sm:$0xff]  ;;  %v383_v29 = vpack.c.bf16 %v73_v17, %v71_v16  ;;  %p519_p13 = por %p518_p12, %p517_p11 }
  0x3e   :  { %v405_v21 = vpack.c.bf16 %v195_v19, %v194_v18  ;;  %v179_v22 = vld [vmem:[#allocation7 + $0x8] sm:$0xff]  ;;  %v197_v24 = vld [vmem:[#allocation7 + $0x98] sm:$0xff]  ;;  %v180_v31 = vld [vmem:[#allocation7 + $0x10] sm:$0xff] }
  0x3f   :  { %v76_v25 = vld [vmem:[#allocation5 + $0x68] sm:$0xff]  ;;  %v78_v26 = vld [vmem:[#allocation5 + $0x78] sm:$0xff]  ;;  %v407_v27 = vpack.c.bf16 %v179_v22, %v178_v20  ;;  %v409_v28 = vpack.c.bf16 %v197_v24, %v196_v23  ;;  %v198_v33 = vld [vmem:[#allocation7 + $0xa0] sm:$0xff]  ;;  %p520_p0 = pnand %p519_p13, %p513_p10 }
  0x40   :  { %406 = vmatprep.subr.bf16.mxu1 %v405_v21  ;;  %v385_v30 = vpack.c.bf16 %v78_v26, %v76_v25  ;;  %v181_v32 = vld [vmem:[#allocation7 + $0x18] sm:$0xff]  ;;  %v199_v34 = vld [vmem:[#allocation7 + $0xa8] sm:$0xff]  ;;  %v75_v36 = vld [vmem:[#allocation5 + $0x60] sm:$0xff] }
  0x41   :  { %408 = vmatpush3.bf16.xpose.msra.mxu1 %v407_v27  ;;  %v411_v35 = vpack.c.bf16 %v181_v32, %v180_v31  ;;  %v77_v37 = vld [vmem:[#allocation5 + $0x70] sm:$0xff]  ;;  %v413_v38 = vpack.c.bf16 %v199_v34, %v198_v33  ;;  %v80_v39 = vld [vmem:[#allocation5 + $0x88] sm:$0xff]  ;;  %v82_v40 = vld [vmem:[#allocation5 + $0x98] sm:$0xff] }
  0x42   :  { %410 = vmatprep.subr.bf16.mxu1 %v409_v28  ;;  %v387_v41 = vpack.c.bf16 %v77_v37, %v75_v36  ;;  %v389_v42 = vpack.c.bf16 %v82_v40, %v80_v39  ;;  %v182_v43 = vld [vmem:[#allocation7 + $0x20] sm:$0xff]  ;;  %v183_v44 = vld [vmem:[#allocation7 + $0x28] sm:$0xff]  ;;  %v200_v45 = vld [vmem:[#allocation7 + $0xb0] sm:$0xff] }
  0x43   :  { %v201_v46 = vld [vmem:[#allocation7 + $0xb8] sm:$0xff]  ;;  %v415_v47 = vpack.c.bf16 %v183_v44, %v182_v43  ;;  %v79_v48 = vld [vmem:[#allocation5 + $0x80] sm:$0xff]  ;;  %v81_v49 = vld [vmem:[#allocation5 + $0x90] sm:$0xff] }
  0x44   :  { %380 = vmatpush1.bf16.xpose.msra.mxu0 %v379_v13  ;;  %v417_v50 = vpack.c.bf16 %v201_v46, %v200_v45  ;;  %v84_v51 = vld [vmem:[#allocation5 + $0xa8] sm:$0xff]  ;;  %v86_v52 = vld [vmem:[#allocation5 + $0xb8] sm:$0xff]  ;;  %v391_v53 = vpack.c.bf16 %v81_v49, %v79_v48  ;;  %v184_v55 = vld [vmem:[#allocation7 + $0x30] sm:$0xff] }
  0x45   :  { %382 = vmatprep.subr.bf16.mxu0 %v381_v14  ;;  %v393_v54 = vpack.c.bf16 %v86_v52, %v84_v51  ;;  %v185_v56 = vld [vmem:[#allocation7 + $0x38] sm:$0xff]  ;;  %v202_v57 = vld [vmem:[#allocation7 + $0xc0] sm:$0xff]  ;;  %v203_v58 = vld [vmem:[#allocation7 + $0xc8] sm:$0xff] }
  0x46   :  { %v419_v59 = vpack.c.bf16 %v185_v56, %v184_v55  ;;  %v83_v60 = vld [vmem:[#allocation5 + $0xa0] sm:$0xff]  ;;  %v85_v61 = vld [vmem:[#allocation5 + $0xb0] sm:$0xff]  ;;  %v421_v62 = vpack.c.bf16 %v203_v58, %v202_v57  ;;  %v88_v63 = vld [vmem:[#allocation5 + $0xc8] sm:$0xff] }
  0x47   :  { %v90_v0 = vld [vmem:[#allocation5 + $0xd8] sm:$0xff]  ;;  %v395_v1 = vpack.c.bf16 %v85_v61, %v83_v60  ;;  %v186_v3 = vld [vmem:[#allocation7 + $0x40] sm:$0xff]  ;;  %v187_v4 = vld [vmem:[#allocation7 + $0x48] sm:$0xff] }
  0x48   :  { %v397_v2 = vpack.c.bf16 %v90_v0, %v88_v63  ;;  %v204_v5 = vld [vmem:[#allocation7 + $0xd0] sm:$0xff]  ;;  %v205_v6 = vld [vmem:[#allocation7 + $0xd8] sm:$0xff]  ;;  %v423_v7 = vpack.c.bf16 %v187_v4, %v186_v3  ;;  %v87_v8 = vld [vmem:[#allocation5 + $0xc0] sm:$0xff] }
  0x49   :  { %412 = vmatpush3.bf16.xpose.msra.mxu1 %v411_v35  ;;  %v89_v9 = vld [vmem:[#allocation5 + $0xd0] sm:$0xff]  ;;  %v425_v10 = vpack.c.bf16 %v205_v6, %v204_v5  ;;  %v92_v11 = vld [vmem:[#allocation5 + $0xe8] sm:$0xff]  ;;  %v94_v12 = vld [vmem:[#allocation5 + $0xf8] sm:$0xff] }
  0x4a   :  { %414 = vmatprep.subr.bf16.mxu1 %v413_v38  ;;  %v399_v13 = vpack.c.bf16 %v89_v9, %v87_v8  ;;  %v401_v14 = vpack.c.bf16 %v94_v12, %v92_v11  ;;  %v188_v15 = vld [vmem:[#allocation7 + $0x50] sm:$0xff]  ;;  %v189_v16 = vld [vmem:[#allocation7 + $0x58] sm:$0xff]  ;;  %v206_v17 = vld [vmem:[#allocation7 + $0xe0] sm:$0xff] }
  0x4b   :  { %v207_v18 = vld [vmem:[#allocation7 + $0xe8] sm:$0xff]  ;;  %v427_v19 = vpack.c.bf16 %v189_v16, %v188_v15  ;;  %v91_v20 = vld [vmem:[#allocation5 + $0xe0] sm:$0xff]  ;;  %v93_v21 = vld [vmem:[#allocation5 + $0xf0] sm:$0xff] }
  0x4c   :  { %384 = vmatpush1.bf16.xpose.msra.mxu0 %v383_v29  ;;  %v429_v22 = vpack.c.bf16 %v207_v18, %v206_v17  ;;  %v403_v23 = vpack.c.bf16 %v93_v21, %v91_v20  ;;  %v190_v24 = vld [vmem:[#allocation7 + $0x60] sm:$0xff]  ;;  %v191_v25 = vld [vmem:[#allocation7 + $0x68] sm:$0xff]  ;;  %v208_v26 = vld [vmem:[#allocation7 + $0xf0] sm:$0xff] }
  0x4d   :  { %386 = vmatprep.subr.bf16.mxu0 %v385_v30  ;;  %v209_v27 = vld [vmem:[#allocation7 + $0xf8] sm:$0xff]  ;;  %v431_v28 = vpack.c.bf16 %v191_v25, %v190_v24  ;;  %v59_v30 = vld [vmem:[#allocation2] sm:$0xff]  ;;  %v192_v32 = vld [vmem:[#allocation7 + $0x70] sm:$0xff] }
  0x4e   :  { %v433_v29 = vpack.c.bf16 %v209_v27, %v208_v26  ;;  %v62_v31 = vld [vmem:[#allocation2 + $0x18] sm:$0xff]  ;;  %v61_v34 = vld [vmem:[#allocation2 + $0x10] sm:$0xff] }
  0x4f   :  { %v193_v33 = vld [vmem:[#allocation7 + $0x78] sm:$0xff] }
  0x50   :  { %v435_v35 = vpack.c.bf16 %v193_v33, %v192_v32 }
  0x51   :  { %416 = vmatpush3.bf16.xpose.msra.mxu1 %v415_v47 }
  0x52   :  { %418 = vmatprep.subr.bf16.mxu1 %v417_v50 }
  0x54   :  { %388 = vmatpush1.bf16.xpose.msra.mxu0 %v387_v41 }
  0x55   :  { %390 = vmatprep.subr.bf16.mxu0 %v389_v42 }
  0x59   :  { %420 = vmatpush3.bf16.xpose.msra.mxu1 %v419_v59 }
  0x5a   :  { %422 = vmatprep.subr.bf16.mxu1 %v421_v62 }
  0x5c   :  { %392 = vmatpush1.bf16.xpose.msra.mxu0 %v391_v53 }
  0x5d   :  { %394 = vmatprep.subr.bf16.mxu0 %v393_v54 }
  0x61   :  { %424 = vmatpush3.bf16.xpose.msra.mxu1 %v423_v7 }
  0x62   :  { %426 = vmatprep.subr.bf16.mxu1 %v425_v10 }
  0x64   :  { %396 = vmatpush1.bf16.xpose.msra.mxu0 %v395_v1 }
  0x65   :  { %398 = vmatprep.subr.bf16.mxu0 %v397_v2 }
  0x69   :  { %428 = vmatpush3.bf16.xpose.msra.mxu1 %v427_v19 }
  0x6a   :  { %430 = vmatprep.subr.bf16.mxu1 %v429_v22 }
  0x6c   :  { %400 = vmatpush1.bf16.xpose.msra.mxu0 %v399_v13 }
  0x6d   :  { %402 = vmatprep.subr.bf16.mxu0 %v401_v14 }
  0x71   :  { %432 = vmatpush3.bf16.xpose.msra.mxu1 %v431_v28 }
  0x72   :  { %434 = vmatprep.subr.bf16.mxu1 %v433_v29 }
  0x74   :  { %404 = vmatpush1.bf16.xpose.msra.mxu0 %v403_v23 }
  0x79   :  { %436 = vmatpush3.bf16.xpose.msra.mxu1 %v435_v35 }
  0x7b   :  { %160 = vmatmul.mubr.f32.vlgmr.msra.gmra.mrb[0].mxu0 %v59_v30 }
  0x7c   :  { %164 = vmatprep.mubr.f32.mxu0 %v62_v31 }
  0x7f   :  { %165 = vmatmul.mubr.f32.gmra.mrb[2].mxu0 %v61_v34 }
 0x14e   :  { %v161_v36 = vpop.f32.mrb[0].mxu0 }
 0x14f   :  { %vm170_vm0 = vcmp.ge.f32.partialorder %v161_v36, 0.0  ;;  %v172_v37 = vmul.f32 0.01, %v161_v36  ;;  %v163_v38 = vpop.f32.mrb[1].mxu0 }
 0x151   :  { %v174_v39 = vsel %vm170_vm0, %v161_v36, %v172_v37 }
 0x152   :  { %v166_v40 = vpop.f32.mrb[2].mxu0  ;;  %369 = vmatprep.mubr.f32.mxu1 %v174_v39  ;;  %176 = vst [vmem:[#allocation8] sm:$0xff] %v174_v39 }
 0x153   :  { %vm171_vm1 = vcmp.ge.f32.partialorder %v166_v40, 0.0  ;;  %v173_v41 = vmul.f32 0.01, %v166_v40  ;;  %v168_v42 = vpop.f32.mrb[3].mxu0  ;;  %370 = vmatmul.mubr.f32.vlgmr.msra.gmra.mrb[0].mxu1 %v174_v39 }
 0x155   :  { %v175_v43 = vsel %vm171_vm1, %v166_v40, %v173_v41 }
 0x156   :  { %371 = vmatprep.mubr.f32.mxu1 %v175_v43  ;;  %177 = vst [vmem:[#allocation8 + $0x8] sm:$0xff] %v175_v43 }
 0x157   :  { %372 = vmatmul.mubr.f32.gmra.mrb[2].mxu1 %v175_v43 }
 0x158   :  { %523 = shalt.err (!%p520_p0)
}
 0x159   :  { %s524_s7 = scalar_lea.hbm %s683_s3, 256 }
 0x15a   :  { %p525_p1 = scmp.ne.s32.totalorder %s683_s3, %s524_s7  ;;  %p528_p2 = scmp.lt.u32.totalorder %s524_s7, %s683_s3 }
 0x15c   :  { %p530_p3 = pnand %p528_p2, %p525_p1 }
 0x15e   :  { %533 = shalt.err (!%p530_p3)
}
 0x15f   :  { %314 = dma.vmem_to_hbm [thread:$0]  %s309_s29, 256, %s683_s3, [#allocation4], %s569_s0, %s569_s0, %s570_s18  }
 0x160   :  { %s572_s13 = smov [#allocation9]  }
 0x161   :  { %s320_s14 = sshll.u32 %s572_s13, 4  ;;  %s321_s14 = int_to_ptr.vmem [resolvable:$true] %s320_s14 }
 0x162   :  { %s534_s3 = scalar_lea.vmem %s321_s14, 512  ;;  %p539_p5 = scmp.lt.s32.totalorder %s321_s14, %s321_s14 }
 0x163   :  { %p535_p4 = scmp.ne.s32.totalorder %s321_s14, %s534_s3  ;;  %p540_p6 = scmp.lt.s32.totalorder %s534_s3, %s534_s3 }
 0x165   :  { %p541_p7 = por %p540_p6, %p539_p5 }
 0x167   :  { %p542_p8 = pnand %p541_p7, %p535_p4 }
 0x226   :  { %v276_v44 = vpop.f32.mrb[0].mxu1 }
 0x227   :  { %vm287_vm2 = vcmp.ge.f32.partialorder %v276_v44, 0.0  ;;  %v291_v45 = vmul.f32 0.01, %v276_v44  ;;  %v278_v46 = vpop.f32.mrb[1].mxu1 }
 0x228   :  { %vm288_vm3 = vcmp.ge.f32.partialorder %v278_v46, 0.0  ;;  %v292_v47 = vmul.f32 0.01, %v278_v46 }
 0x229   :  { %v295_v48 = vsel %vm287_vm2, %v276_v44, %v291_v45 }
 0x22a   :  { %299 = vst [vmem:[#allocation9] sm:$0xff] %v295_v48  ;;  %v296_v49 = vsel %vm288_vm3, %v278_v46, %v292_v47  ;;  %v282_v50 = vpop.f32.mrb[2].mxu1 }
 0x22b   :  { %300 = vst [vmem:[#allocation9 + $0x8] sm:$0xff] %v296_v49  ;;  %vm289_vm4 = vcmp.ge.f32.partialorder %v282_v50, 0.0  ;;  %v293_v51 = vmul.f32 0.01, %v282_v50  ;;  %v284_v52 = vpop.f32.mrb[3].mxu1 }
 0x22c   :  { %vm290_vm5 = vcmp.ge.f32.partialorder %v284_v52, 0.0  ;;  %v294_v53 = vmul.f32 0.01, %v284_v52 }
 0x22d   :  { %v297_v54 = vsel %vm289_vm4, %v282_v50, %v293_v51 }
 0x22e   :  { %301 = vst [vmem:[#allocation9 + $0x10] sm:$0xff] %v297_v54  ;;  %v298_v55 = vsel %vm290_vm5, %v284_v52, %v294_v53 }
 0x22f   :  { %302 = vst [vmem:[#allocation9 + $0x18] sm:$0xff] %v298_v55 }
 0x230   :  { %545 = shalt.err (!%p542_p8)
}
 0x231   :  { %s546_s17 = scalar_lea.hbm %s684_s4, 512 }
 0x232   :  { %p547_p9 = scmp.ne.s32.totalorder %s684_s4, %s546_s17  ;;  %p550_p10 = scmp.lt.u32.totalorder %s546_s17, %s684_s4 }
 0x234   :  { %p552_p11 = pnand %p550_p10, %p547_p9 }
 0x236   :  { %555 = shalt.err (!%p552_p11)
}
 0x237   :  { %326 = dma.vmem_to_hbm [thread:$0]  %s321_s14, 512, %s684_s4, [#allocation10], %s566_s27, %s566_s27, %s567_s28  }
 0x238   :  { %560 = dma.done.wait [#allocation4], 256  }
 0x239   :  { %561 = vsyncadd [#allocation4], 4294967040 }
 0x23a   :  { %562 = dma.done.wait [#allocation10], 512  }
 0x23b   :  { %563 = vsyncadd [#allocation10], 4294966784 }
 0x23c   :  { %333 = vsyncpa [#allocation3], 1 }
 0x23d   :  { %334 = vsyncpa [#allocation6], 1 }
 0x23e   :  { %335 = vsyncpa [#allocation4], 1 }
 0x23f   :  { %336 = vsyncpa [#allocation10], 1 }

</bundles_post_ra>
